<compile_context>
chip_gen: v5e
topology: v5e:2x2
jax: 0.10.0
libtpu: 0.0.40
codegen_flags: <defaults>
</compile_context>

<pallas_src>
import functools

import jax
import jax.numpy as jnp
from jax import lax
from jax.experimental import pallas as pl
from jax.experimental.pallas import tpu as pltpu


def _dnf_kernel(x_ref, w1_ref, b1_ref, w2_ref, b2_ref, w3_ref, b3_ref,
                wt_ref, o_ref, *, ew_dtype):
    # x_ref:  (TB, D) f32 block in the input's natural layout (batch on sublanes)
    # w1_ref: (H,  D) bf16     b1_ref: (H, 1)  ew_dtype
    # w2_ref: (H2, H) bf16     b2_ref: (H2, 1) ew_dtype
    # w3_ref: (H2, 1) f32      b3_ref: (1, 1)  f32 scalar in SMEM
    # wt_ref: (2, TB) f32   row 0 = weather_severity, row 1 = track_difficulty
    # o_ref:  (1, TB) f32   lane-dense output tile (unmasked vector stores)

    # Cast x on-chip (removes the wrapper-side bf16 pass over x in HBM).
    x = x_ref[...].astype(jnp.bfloat16)                          # (TB, D)

    # Layer 1: ReLU(W1 @ x^T + b1).  The transpose is folded into the MXU
    # contraction (both operands contract their last axis) -> (H, TB) f32 acc.
    dn = (((1,), (1,)), ((), ()))
    h1 = lax.dot_general(w1_ref[...], x, dimension_numbers=dn,
                         preferred_element_type=jnp.float32)     # (H, TB)
    h1 = jnp.maximum(h1.astype(ew_dtype) + b1_ref[...], 0.0)     # (H, TB)
    # TODO(synk): Dropout(0.3) reproduced in eval mode (identity); training-mode
    # stochastic masking omitted.

    # Layer 2: ReLU(W2 @ h1 + b2); bf16 MXU operands, f32 accumulate.
    h2 = jnp.dot(w2_ref[...], h1.astype(jnp.bfloat16),
                 preferred_element_type=jnp.float32)             # (H2, TB)
    h2 = jnp.maximum(h2.astype(ew_dtype) + b2_ref[...], 0.0)     # (H2, TB)

    # Layer 3 (out_features == 1): VPU broadcast-multiply by the (H2, 1) weight
    # column + XLU sublane reduce (f32 accumulation via dtype promotion).
    logit = jnp.sum(h2 * w3_ref[...], axis=0, keepdims=True)     # (1, TB) f32

    # Epilogue: scalar bias + fused race-feature adjustments + stable sigmoid.
    logit = logit + b3_ref[0, 0]
    logit = logit + (wt_ref[0:1, :] * 0.5 + wt_ref[1:2, :] * 0.3)
    # sigma(z) = 0.5 * (1 + tanh(z/2)): one EUP op, no overflow for |z| large.
    o_ref[...] = 0.5 * (jnp.tanh(0.5 * logit) + 1.0)


def _round_up(n, m):
    return ((n + m - 1) // m) * m


def dnf_predictor_pallas(x, w1, b1, w2, b2, w3, b3, weather, track, *,
                         block_b=8192):
    """DNFPredictor.forward.

    Args (PyTorch (out, in) weight layout, f32):
      x:       (B, D)   driver features (natural layout; transposed on-chip)
      w1, b1:  (H, D), (H,)     sampled VariationalLinear(D, H)
      w2, b2:  (H2, H), (H2,)   sampled VariationalLinear(H, H2)
      w3, b3:  (1, H2), (1,)    sampled VariationalLinear(H2, 1)
      weather, track: (B, 1) race features
      block_b: batch tile (lane) width, rounded to a multiple of 128.
               Default 8192 amortises per-grid-step overhead and fits the
               16 MiB scoped-VMEM default on every generation.  It is
               auto-capped at 8192 on v5-and-older; on v6e/v7x values up to
               ~16-32K are allowed (scoped VMEM is raised automatically), and
               the tile is always shrunk so B splits into >= 2 grid steps when
               possible (keeps both v7x TensorCores busy).
    Returns: (B, 1) f32 DNF probabilities.
    """
    B, D = x.shape
    H = w1.shape[0]
    H2 = w2.shape[0]

    kind = jax.devices()[0].device_kind.lower()
    pre_v6 = any(v in kind for v in ("v2", "v3", "v4", "v5"))

    # Batch tile selection.
    tb = _round_up(max(block_b, 128), 128)
    tb = min(tb, max(128, _round_up(pl.cdiv(B, 2), 128)))  # >= 2 grid steps if B > 128
    if pre_v6:
        tb = min(tb, 8192)          # stay inside v5e's 16 MiB scoped-VMEM default
    b_pad = _round_up(B, tb)
    grid = (b_pad // tb,)

    # bf16 elementwise (bias+ReLU, inter-layer casts) on v6e/v7x; f32 on v5e-.
    ew_dtype = jnp.float32 if pre_v6 else jnp.bfloat16

    # Inputs stay in their natural layout: no wrapper transpose / bf16 pass
    # over x.  Pad only when B is not already a tile multiple.
    x_in = x.astype(jnp.float32)
    wt = jnp.concatenate(
        [jnp.reshape(weather, (1, B)), jnp.reshape(track, (1, B))],
        axis=0).astype(jnp.float32)                      # (2, B) packed features
    if b_pad != B:
        x_in = jnp.pad(x_in, ((0, b_pad - B), (0, 0)))
        wt = jnp.pad(wt, ((0, 0), (0, b_pad - B)))

    w1b = w1.astype(jnp.bfloat16)                        # (H, D)
    w2b = w2.astype(jnp.bfloat16)                        # (H2, H)
    w3c = jnp.reshape(w3, (H2, 1)).astype(jnp.float32)   # layer-3 weight column
    b1c = jnp.reshape(b1, (H, 1)).astype(ew_dtype)
    b2c = jnp.reshape(b2, (H2, 1)).astype(ew_dtype)
    b3s = jnp.reshape(b3, (1, 1)).astype(jnp.float32)

    const = lambda shape: pl.BlockSpec(shape, lambda i: (0, 0))  # VMEM-resident

    kernel = functools.partial(_dnf_kernel, ew_dtype=ew_dtype)

    out = pl.pallas_call(
        kernel,
        out_shape=jax.ShapeDtypeStruct((1, b_pad), jnp.float32),
        grid=grid,
        in_specs=[
            pl.BlockSpec((tb, D), lambda i: (i, 0)),              # x (tb, D)
            const((H, D)), const((H, 1)),                         # w1, b1
            const((H2, H)), const((H2, 1)),                       # w2, b2
            const((H2, 1)),                                       # w3 column
            pl.BlockSpec(memory_space=pltpu.MemorySpace.SMEM),    # b3 scalar
            pl.BlockSpec((2, tb), lambda i: (0, i)),              # [weather; track]
        ],
        out_specs=pl.BlockSpec((1, tb), lambda i: (0, i)),        # lane-dense out
        compiler_params=pltpu.CompilerParams(
            dimension_semantics=("parallel",),
            # Only very wide tiles (>8K lanes, v6e/v7x territory) need more
            # scoped VMEM than the default.
            vmem_limit_bytes=(48 << 20) if tb > 8192 else None),
    )(x_in, w1b, b1c, w2b, b2c, w3c, b3s, wt)

    return out[0, :B].reshape(B, 1)


# ----------------------------------------------------------------------------
# Parameter setup matching VariationalLinear(sample=True) at init.
# ----------------------------------------------------------------------------
def xavier_normal(key, out_features, in_features):
    # Matches torch.nn.init.xavier_normal_ (gain=1).
    std = (2.0 / (in_features + out_features)) ** 0.5
    return std * jax.random.normal(key, (out_features, in_features), jnp.float32)


def sample_variational_linear(key, in_features, out_features):
    """Sampled (W, b) in PyTorch (out, in) layout, VariationalLinear(sample=True)."""
    k_mu, k_weps, k_beps = jax.random.split(key, 3)
    weight_mu = xavier_normal(k_mu, out_features, in_features)
    weight_rho = jnp.full((out_features, in_features), -5.0, jnp.float32)
    bias_mu = jnp.zeros((out_features,), jnp.float32)
    bias_rho = jnp.full((out_features,), -5.0, jnp.float32)

    weight_sigma = jnp.log1p(jnp.exp(weight_rho))
    bias_sigma = jnp.log1p(jnp.exp(bias_rho))
    weight = weight_mu + weight_sigma * jax.random.normal(k_weps, weight_mu.shape)
    bias = bias_mu + bias_sigma * jax.random.normal(k_beps, bias_mu.shape)
    return weight, bias                               # (out, in), (out,)


if __name__ == "__main__":
    D, H = 16, 64                  # input_dim, hidden_dim (module default)
    H2 = H // 2

    key = jax.random.PRNGKey(0)
    kx, kw1, kw2, kw3 = jax.random.split(key, 4)

    w1, b1 = sample_variational_linear(kw1, D, H)       # (H, D),  (H,)
    w2, b2 = sample_variational_linear(kw2, H, H2)      # (H2, H), (H2,)
    w3, b3 = sample_variational_linear(kw3, H2, 1)      # (1, H2), (1,)

    def reference(x, weather, track):
        # Pure-JAX f32 reference (kernel uses bf16 MXU/VPU operands, so compare
        # with a loose tolerance).
        h1 = jnp.maximum(x @ w1.T + b1, 0.0)
        h2 = jnp.maximum(h1 @ w2.T + b2, 0.0)
        logit = h2 @ w3.T + b3 + 0.5 * weather + 0.3 * track
        return jax.nn.sigmoid(logit)

    # Two small batches: one tile-aligned, one exercising the B % 128 != 0
    # padding path.
    for B in (256, 200):
        kb = jax.random.fold_in(kx, B)
        k1, k2, k3 = jax.random.split(kb, 3)
        x = jax.random.normal(k1, (B, D), jnp.float32)
        weather = jax.random.uniform(k2, (B, 1), jnp.float32)
        track = jax.random.uniform(k3, (B, 1), jnp.float32)

        out = dnf_predictor_pallas(x, w1, b1, w2, b2, w3, b3, weather, track)
        out = jax.block_until_ready(out)
        ref = reference(x, weather, track)

        assert out.shape == (B, 1), out.shape
        err = float(jnp.max(jnp.abs(out - ref)))
        assert jnp.allclose(out, ref, atol=2e-2, rtol=2e-2), (B, err)

    print("KERNEL_OK")
</pallas_src>

<mosaic_0001>
module attributes {stable_mosaic.version = 11 : i64} {
  func.func @_dnf_kernel(%arg0: i32, %arg1: memref<128x16xf32, #tpu.memory_space<vmem>>, %arg2: memref<64x16xbf16, #tpu.memory_space<vmem>>, %arg3: memref<64x1xbf16, #tpu.memory_space<vmem>>, %arg4: memref<32x64xbf16, #tpu.memory_space<vmem>>, %arg5: memref<32x1xbf16, #tpu.memory_space<vmem>>, %arg6: memref<32x1xf32, #tpu.memory_space<vmem>>, %arg7: memref<1x1xf32, #tpu.memory_space<smem>>, %arg8: memref<2x128xf32, #tpu.memory_space<vmem>>, %arg9: memref<1x128xf32, #tpu.memory_space<vmem>>) attributes {dimension_semantics = [#tpu.dimension_semantics<parallel>], iteration_bounds = array<i64: 2>, scalar_prefetch = 0 : i64, scratch_operands = 0 : i64, tpu.core_type = #tpu.core_type<tc>, window_params = [{transform_indices = @transform_0, window_bounds = array<i64: 128, 16>}, {pipeline_mode = #tpu.pipeline_mode<synchronous>, transform_indices = @transform_1, window_bounds = array<i64: 64, 16>}, {pipeline_mode = #tpu.pipeline_mode<synchronous>, transform_indices = @transform_2, window_bounds = array<i64: 64, 1>}, {pipeline_mode = #tpu.pipeline_mode<synchronous>, transform_indices = @transform_3, window_bounds = array<i64: 32, 64>}, {pipeline_mode = #tpu.pipeline_mode<synchronous>, transform_indices = @transform_4, window_bounds = array<i64: 32, 1>}, {pipeline_mode = #tpu.pipeline_mode<synchronous>, transform_indices = @transform_5, window_bounds = array<i64: 32, 1>}, {transform_indices = @transform_6, window_bounds = array<i64: 1, 1>}, {transform_indices = @transform_7, window_bounds = array<i64: 2, 128>}, {transform_indices = @transform_8, window_bounds = array<i64: 1, 128>}]} {
    %c0 = arith.constant 0 : index
    %c0_0 = arith.constant 0 : index
    %0 = vector.load %arg1[%c0, %c0_0] : memref<128x16xf32, #tpu.memory_space<vmem>>, vector<128x16xf32>
    %1 = arith.truncf %0 : vector<128x16xf32> to vector<128x16xbf16>
    %c0_1 = arith.constant 0 : index
    %c0_2 = arith.constant 0 : index
    %2 = vector.load %arg2[%c0_1, %c0_2] : memref<64x16xbf16, #tpu.memory_space<vmem>>, vector<64x16xbf16>
    %cst = arith.constant dense<0.000000e+00> : vector<64x128xf32>
    %3 = tpu.matmul %2, %1, %cst {dimension_numbers = #tpu.dot_dimension_numbers<[1], [1], [0], [0], [0, 0, 1, 0], [], []>} : vector<64x16xbf16>, vector<128x16xbf16>, vector<64x128xf32> -> vector<64x128xf32>
    %4 = arith.truncf %3 : vector<64x128xf32> to vector<64x128xbf16>
    %c0_3 = arith.constant 0 : index
    %c0_4 = arith.constant 0 : index
    %5 = vector.load %arg3[%c0_3, %c0_4] : memref<64x1xbf16, #tpu.memory_space<vmem>>, vector<64x1xbf16>
    %6 = vector.broadcast %5 : vector<64x1xbf16> to vector<64x128xbf16>
    %7 = arith.addf %4, %6 : vector<64x128xbf16>
    %cst_5 = arith.constant 0.000000e+00 : bf16
    %8 = vector.broadcast %cst_5 : bf16 to vector<64x128xbf16>
    %9 = arith.maximumf %7, %8 : vector<64x128xbf16>
    %c0_6 = arith.constant 0 : index
    %c0_7 = arith.constant 0 : index
    %10 = vector.load %arg4[%c0_6, %c0_7] : memref<32x64xbf16, #tpu.memory_space<vmem>>, vector<32x64xbf16>
    %cst_8 = arith.constant dense<0.000000e+00> : vector<32x128xf32>
    %11 = tpu.matmul %10, %9, %cst_8 {dimension_numbers = #tpu.dot_dimension_numbers<[1], [0], [0], [1], [0, 0, 1, 1], [], []>} : vector<32x64xbf16>, vector<64x128xbf16>, vector<32x128xf32> -> vector<32x128xf32>
    %12 = arith.truncf %11 : vector<32x128xf32> to vector<32x128xbf16>
    %c0_9 = arith.constant 0 : index
    %c0_10 = arith.constant 0 : index
    %13 = vector.load %arg5[%c0_9, %c0_10] : memref<32x1xbf16, #tpu.memory_space<vmem>>, vector<32x1xbf16>
    %14 = vector.broadcast %13 : vector<32x1xbf16> to vector<32x128xbf16>
    %15 = arith.addf %12, %14 : vector<32x128xbf16>
    %cst_11 = arith.constant 0.000000e+00 : bf16
    %16 = vector.broadcast %cst_11 : bf16 to vector<32x128xbf16>
    %17 = arith.maximumf %15, %16 : vector<32x128xbf16>
    %c0_12 = arith.constant 0 : index
    %c0_13 = arith.constant 0 : index
    %18 = vector.load %arg6[%c0_12, %c0_13] : memref<32x1xf32, #tpu.memory_space<vmem>>, vector<32x1xf32>
    %19 = arith.extf %17 : vector<32x128xbf16> to vector<32x128xf32>
    %20 = vector.broadcast %18 : vector<32x1xf32> to vector<32x128xf32>
    %21 = arith.mulf %19, %20 : vector<32x128xf32>
    %cst_14 = arith.constant dense<0.000000e+00> : vector<128xf32>
    %22 = vector.multi_reduction <add>, %21, %cst_14 [0] : vector<32x128xf32> to vector<128xf32>
    %23 = vector.shape_cast %22 : vector<128xf32> to vector<1x128xf32>
    %c0_15 = arith.constant 0 : index
    %c0_16 = arith.constant 0 : index
    %24 = memref.load %arg7[%c0_15, %c0_16] : memref<1x1xf32, #tpu.memory_space<smem>>
    %25 = vector.broadcast %24 : f32 to vector<1x128xf32>
    %26 = arith.addf %23, %25 : vector<1x128xf32>
    %c0_17 = arith.constant 0 : index
    %c0_18 = arith.constant 0 : index
    %27 = vector.load %arg8[%c0_17, %c0_18] : memref<2x128xf32, #tpu.memory_space<vmem>>, vector<1x128xf32>
    %cst_19 = arith.constant 5.000000e-01 : f32
    %28 = vector.broadcast %cst_19 : f32 to vector<1x128xf32>
    %29 = arith.mulf %27, %28 : vector<1x128xf32>
    %c1 = arith.constant 1 : index
    %c0_20 = arith.constant 0 : index
    %30 = vector.load %arg8[%c1, %c0_20] : memref<2x128xf32, #tpu.memory_space<vmem>>, vector<1x128xf32>
    %cst_21 = arith.constant 3.000000e-01 : f32
    %31 = vector.broadcast %cst_21 : f32 to vector<1x128xf32>
    %32 = arith.mulf %30, %31 : vector<1x128xf32>
    %33 = arith.addf %29, %32 : vector<1x128xf32>
    %34 = arith.addf %26, %33 : vector<1x128xf32>
    %cst_22 = arith.constant 5.000000e-01 : f32
    %35 = vector.broadcast %cst_22 : f32 to vector<1x128xf32>
    %36 = arith.mulf %35, %34 : vector<1x128xf32>
    %37 = math.tanh %36 : vector<1x128xf32>
    %cst_23 = arith.constant 1.000000e+00 : f32
    %38 = vector.broadcast %cst_23 : f32 to vector<1x128xf32>
    %39 = arith.addf %37, %38 : vector<1x128xf32>
    %cst_24 = arith.constant 5.000000e-01 : f32
    %40 = vector.broadcast %cst_24 : f32 to vector<1x128xf32>
    %41 = arith.mulf %40, %39 : vector<1x128xf32>
    %c0_25 = arith.constant 0 : index
    %c0_26 = arith.constant 0 : index
    %42 = vector.load %arg9[%c0_25, %c0_26] : memref<1x128xf32, #tpu.memory_space<vmem>>, vector<1x128xf32>
    tpu.vector_store %arg9[%c0_25, %c0_26], %41 {strides = array<i32>} : memref<1x128xf32, #tpu.memory_space<vmem>>, vector<1x128xf32>,
    return
  }
  func.func @transform_0(%arg0: i32) -> (i32, i32) {
    %c0_i32 = arith.constant 0 : i32
    %c0_i32_0 = arith.constant 0 : i32
    return %arg0, %c0_i32 : i32, i32
  }
  func.func @transform_1(%arg0: i32) -> (i32, i32) {
    %c0_i32 = arith.constant 0 : i32
    %c0_i32_0 = arith.constant 0 : i32
    %c0_i32_1 = arith.constant 0 : i32
    return %c0_i32, %c0_i32_0 : i32, i32
  }
  func.func @transform_2(%arg0: i32) -> (i32, i32) {
    %c0_i32 = arith.constant 0 : i32
    %c0_i32_0 = arith.constant 0 : i32
    %c0_i32_1 = arith.constant 0 : i32
    return %c0_i32, %c0_i32_0 : i32, i32
  }
  func.func @transform_3(%arg0: i32) -> (i32, i32) {
    %c0_i32 = arith.constant 0 : i32
    %c0_i32_0 = arith.constant 0 : i32
    %c0_i32_1 = arith.constant 0 : i32
    return %c0_i32, %c0_i32_0 : i32, i32
  }
  func.func @transform_4(%arg0: i32) -> (i32, i32) {
    %c0_i32 = arith.constant 0 : i32
    %c0_i32_0 = arith.constant 0 : i32
    %c0_i32_1 = arith.constant 0 : i32
    return %c0_i32, %c0_i32_0 : i32, i32
  }
  func.func @transform_5(%arg0: i32) -> (i32, i32) {
    %c0_i32 = arith.constant 0 : i32
    %c0_i32_0 = arith.constant 0 : i32
    %c0_i32_1 = arith.constant 0 : i32
    return %c0_i32, %c0_i32_0 : i32, i32
  }
  func.func @transform_6(%arg0: i32) -> (i32, i32) {
    %c0_i32 = arith.constant 0 : i32
    %c0_i32_0 = arith.constant 0 : i32
    %c0_i32_1 = arith.constant 0 : i32
    return %c0_i32, %c0_i32_0 : i32, i32
  }
  func.func @transform_7(%arg0: i32) -> (i32, i32) {
    %c0_i32 = arith.constant 0 : i32
    %c0_i32_0 = arith.constant 0 : i32
    return %c0_i32, %arg0 : i32, i32
  }
  func.func @transform_8(%arg0: i32) -> (i32, i32) {
    %c0_i32 = arith.constant 0 : i32
    %c0_i32_0 = arith.constant 0 : i32
    return %c0_i32, %arg0 : i32, i32
  }
}

</mosaic_0001>

<bundles_post_ra>
// kernel: tpu_custom_call.1
= control target key start
LH: loop header
LB: loop body
LE: loop exit
PB: predicated region body
PF: predicated region fallthrough
CT: control target
= control target key end

     0   :  { %s1249_s0 = inlined_call_operand.vmem [shape: f32[256,16], index: 0, kind: input, shape index: {}]   ;;  %s1250_s1 = inlined_call_operand.vmem [shape: bf16[64,16], index: 1, kind: input, shape index: {}]   ;;  %s1251_s2 = inlined_call_operand.vmem [shape: bf16[64,1], index: 2, kind: input, shape index: {}]   ;;  %s1252_s3 = inlined_call_operand.vmem [shape: bf16[32,64], index: 3, kind: input, shape index: {}]   ;;  %s1253_s4 = inlined_call_operand.vmem [shape: bf16[32,1], index: 4, kind: input, shape index: {}]   ;;  %s1254_s5 = inlined_call_operand.vmem [shape: f32[32,1], index: 5, kind: input, shape index: {}]   ;;  %s1255_s6 = inlined_call_operand.<no memory space> [shape: f32[1,1], index: 6, kind: input, shape index: {}]   ;;  %s1256_s7 = inlined_call_operand.vmem [shape: f32[2,256], index: 7, kind: input, shape index: {}]   ;;  %s1257_s8 = inlined_call_operand.hbm [shape: f32[1,256], index: 8, kind: output, shape index: {}]  }
   0x1   :  { %13 = sst [smem:[#allocation2]] %s1255_s6 }
   0x2   :  { %14 = vsyncpa [#allocation4], 0 }
   0x3   :  { %16 = vsyncpa [#allocation4 + $0x1], 0  ;;  %s1050_s29 = smov 0   ;;  %s1052_s30 = smov 0  }
   0x4   :  { %s1054_s9 = smov 0   ;;  %s1056_s10 = smov 0  }
   0x5 LB: > { %s1071_s6 = sadd.s32 4294967295, %s998_s10   ;;  %s829_s11 = sadd.s32 4294967294, %s998_s10   ;;  %s998_s10 = sphi %s1056_s10, %s1263_s10   ;;  %s994_s9 = sphi %s1054_s9, %s1262_s9   ;;  %s990_s30 = sphi %s1052_s30, %s1261_s30   ;;  %s986_s29 = sphi %s1050_s29, %s1260_s29  }
   0x6   : > { %s1075_s12 = sadd.s32 1, %s998_s10   ;;  %s207_s13 = sadd.s32 1, %s994_s9 }
   0x7   : > { %s204_s14 = ssub.s32 %s998_s10, %s1075_s12  ;;  %p217_p0 = scmp.ne.s32.totalorder %s994_s9, %s990_s30 }
   0x8   : > { %p205_p1 = scmp.eq.s32.totalorder %s204_s14, 0  ;;  %p218_p2 = scmp.eq.s32.totalorder %s1071_s6, 1 }
   0x9   : > { %p223_p3 = scmp.ne.s32.totalorder %s990_s30, %s986_s29  ;;  %p224_p4 = scmp.eq.s32.totalorder %s829_s11, 1 }
   0xa   : > { %s1086_s15 = scalar_select %p205_p1, %s994_s9, %s207_s13  }
   0xb   : > { %p1088_p5 = por %p218_p2, %p217_p0  ;;  %p1092_p6 = por %p224_p4, %p223_p3 }
   0xc   : > { %p832_p7 = scmp.ge.s32.totalorder %s998_s10, 1  ;;  %p276_p8 = scmp.lt.s32.totalorder %s998_s10, 3 }
   0xe   : > { %p277_p9 = pnand %p832_p7, %p276_p8 }
   0xf   : > { %s833_s18 = sshll.u32 (!%p277_p9), %s1071_s6, 4  ;;  %p319_p11 = scmp.lt.s32.totalorder (!%p277_p9), %s1071_s6, 1 }
  0x10   : > { %280 = sbr.rel (%p277_p9) target bundleno = 470 (0x1d6), region = 52  ;;  %p314_p10 = scmp.lt.s32.totalorder (!%p277_p9), %s833_s18, 31 }
  0x11   : > { %s735_s13 = sld [smem:[#allocation2]] (!%p277_p9)  ;;  %s311_s14 = sand.u32 (!%p277_p9), 1, %s990_s30  }
  0x12   : > { %s758_s20 = scalar_lea.hbm (!%p277_p9), %s1257_s8, %s1071_s6  ;;  %s312_s21 = scalar_lea.vmem (!%p277_p9), [#allocation3], %s311_s14 }
  0x13   : > { %s760_s23 = sshll.u32 (!%p277_p9), %s312_s21, 4  ;;  %s762_s24 = sshll.u32 (!%p277_p9), %s758_s20, 4  ;;  %s761_s23 = int_to_ptr.vmem [resolvable:$true] %s760_s23  ;;  %s763_s24 = int_to_ptr.hbm [resolvable:$true] %s762_s24 }
  0x14   : > { %s750_s25 = scalar_lea.sflag (!%p277_p9), [#allocation4], %s311_s14 }
  0x15   : > { %s1265_s18 = smov (!%p314_p10, %s833_s18), 31  ;;  %vm376_vm0 = vcmask 130048   ;;  %v456_v14 = vld [vmem:[%s1251_s2 + $0x18] sm:$0xf]  ;;  %v1000_v16 = vmov 0   ;;  %v694_v41 = vld [vmem:[%s1254_s5] sm:$0xff] }
  0x16   : > { %s834_s19 = sshll.u32 %s1265_s18, 3  ;;  %931 = vset.pattern.permute.xlu0 %v1000_v16  ;;  %932 = vset.pattern.permute.xlu1 %v1000_v16  ;;  %v457_v24 = vld [vmem:[%s1251_s2 + $0x1c] sm:$0xf]  ;;  %v454_v25 = vld [vmem:[%s1251_s2 + $0x10] sm:$0xf]  ;;  %v868_v45 = vld [vmem:[%s1250_s1] sm:$0xff] }
  0x17   : > { %s1102_s22 = scalar_lea.vmem %s1249_s0, %s834_s19  ;;  %514 = vperm.xlu0 %931, %v456_v14   ;;  %933 = vset.pattern.permute.xlu2 %v1000_v16  ;;  %v450_v30 = vld [vmem:[%s1251_s2] sm:$0xf]  ;;  %v455_v31 = vld [vmem:[%s1251_s2 + $0x14] sm:$0xf]  ;;  %v627_v36 = vld [vmem:[%s1253_s4 + $0x4] sm:$0xf] }
  0x18   : > { %v338_v0 = vld [vmem:[%s1102_s22 + $0x70] sm:$0xff]  ;;  %v339_v1 = vld [vmem:[%s1102_s22 + $0x78] sm:$0xff]  ;;  %v336_v3 = vld [vmem:[%s1102_s22 + $0x60] sm:$0xff]  ;;  %496 = vperm.xlu1 %932, %v454_v25   ;;  %v1001_v59 = vmov 839922192   ;;  %vm596_vm1 = vcmask 523264  }
  0x19   : > { %v347_v2 = vpack.c.bf16 %v339_v1, %v338_v0  ;;  %v337_v4 = vld [vmem:[%s1102_s22 + $0x68] sm:$0xff]  ;;  %v334_v8 = vld [vmem:[%s1102_s22 + $0x50] sm:$0xff]  ;;  %v335_v9 = vld [vmem:[%s1102_s22 + $0x58] sm:$0xff]  ;;  %v464_v60 = vunpack.c.l.s4 %v1001_v59 }
  0x1a   : > { %v346_v6 = vpack.c.bf16 %v337_v4, %v336_v3  ;;  %v345_v10 = vpack.c.bf16 %v335_v9, %v334_v8  ;;  %v332_v12 = vld [vmem:[%s1102_s22 + $0x40] sm:$0xff]  ;;  %v333_v13 = vld [vmem:[%s1102_s22 + $0x48] sm:$0xff]  ;;  %v330_v18 = vld [vmem:[%s1102_s22 + $0x30] sm:$0xff] }
  0x1b   : > { %v411_v5 = vsel %vm376_vm0, %v347_v2, 0  ;;  %v344_v15 = vpack.c.bf16 %v333_v13, %v332_v12  ;;  %v331_v19 = vld [vmem:[%s1102_s22 + $0x38] sm:$0xff]  ;;  %v328_v22 = vld [vmem:[%s1102_s22 + $0x20] sm:$0xff]  ;;  %v329_v23 = vld [vmem:[%s1102_s22 + $0x28] sm:$0xff]  ;;  %v1192_v63 = vunpack.c.0.s8 %v464_v60 }
  0x1c   : > { %875 = vmatpush.bf16.xpose.msra.mxu3 %v411_v5  ;;  %413 = vmatpush.bf16.xpose.msra.mxu0 %v411_v5  ;;  %v408_v7 = vsel %vm376_vm0, %v346_v6, 0  ;;  %v405_v11 = vsel %vm376_vm0, %v345_v10, 0  ;;  %v343_v20 = vpack.c.bf16 %v331_v19, %v330_v18  ;;  %v342_v26 = vpack.c.bf16 %v329_v23, %v328_v22  ;;  %v326_v28 = vld [vmem:[%s1102_s22 + $0x10] sm:$0xff]  ;;  %v327_v29 = vld [vmem:[%s1102_s22 + $0x18] sm:$0xff]  ;;  %v324_v34 = vld [vmem:[%s1102_s22] sm:$0xff] }
  0x1d   : > { %874 = vmatpush.bf16.xpose.msra.mxu2 %v411_v5  ;;  %v402_v17 = vsel %vm376_vm0, %v344_v15, 0  ;;  %v341_v32 = vpack.c.bf16 %v327_v29, %v326_v28  ;;  %v325_v35 = vld [vmem:[%s1102_s22 + $0x8] sm:$0xff]  ;;  %v451_v37 = vld [vmem:[%s1251_s2 + $0x4] sm:$0xf]  ;;  %v870_v44 = vld [vmem:[%s1250_s1 + $0x10] sm:$0xff]  ;;  %s320_s22 = scalar_select %p319_p11, %s1071_s6, 1 }
  0x1e   : > { %v399_v21 = vsel %vm376_vm0, %v343_v20, 0  ;;  %v396_v27 = vsel %vm376_vm0, %v342_v26, 0  ;;  %v452_v38 = vld [vmem:[%s1251_s2 + $0x8] sm:$0xf]  ;;  %v340_v39 = vpack.c.bf16 %v325_v35, %v324_v34  ;;  %v453_v43 = vld [vmem:[%s1251_s2 + $0xc] sm:$0xf] }
  0x1f   : > { %523 = vperm.xlu0 %931, %v457_v24   ;;  %v393_v33 = vsel %vm376_vm0, %v341_v32, 0  ;;  %478 = vperm.xlu2 %933, %v452_v38   ;;  %v628_v42 = vld [vmem:[%s1253_s4 + $0x8] sm:$0xf]  ;;  %v697_v47 = vld [vmem:[%s1254_s5 + $0x18] sm:$0xff]  ;;  %v626_v49 = vld [vmem:[%s1253_s4] sm:$0xf] }
  0x20   : > { %505 = vperm.xlu1 %932, %v455_v31   ;;  %v390_v40 = vsel %vm376_vm0, %v340_v39, 0  ;;  %v869_v46 = vld [vmem:[%s1250_s1 + $0x8] sm:$0xff]  ;;  %v871_v51 = vld [vmem:[%s1250_s1 + $0x18] sm:$0xff]  ;;  %v696_v52 = vld [vmem:[%s1254_s5 + $0x10] sm:$0xff]  ;;  %s835_s26 = sshll.u32 %s320_s22, 1  ;;  %s950_s22 = sshra.s32 %s763_s24, 4  ;;  %s951_s22 = int_to_ptr.hbm [resolvable:$true] %s950_s22 }
  0x21   : > { %v695_v48 = vld [vmem:[%s1254_s5 + $0x8] sm:$0xff]  ;;  %v872_v60 = vld [vmem:[%s1252_s3] sm:$0xff]  ;;  %s322_s11 = scalar_lea.vmem %s1256_s7, %s835_s26  ;;  %s952_s26 = scalar_lea.hbm %s951_s22, 1 }
  0x22   : > { %v629_v50 = vld [vmem:[%s1253_s4 + $0xc] sm:$0xf]  ;;  %p953_p12 = scmp.ne.s32.totalorder %s951_s22, %s952_s26  ;;  %s956_s6 = scalar_lea.hbm %s1257_s8, 2 }
  0x23   : > { %p957_p1 = scmp.lt.s32.totalorder %s951_s22, %s1257_s8  ;;  %p958_p2 = scmp.lt.s32.totalorder %s956_s6, %s952_s26 }
  0x24   : > { %877 = vmatpush.bf16.xpose.msra.mxu3 %v408_v7  ;;  %414 = vmatpush.bf16.xpose.msra.mxu0 %v408_v7  ;;  %p954_p13 = pnand %p953_p12, %p1088_p5 }
  0x25   : > { %876 = vmatpush.bf16.xpose.msra.mxu2 %v408_v7  ;;  %p959_p3 = por %p958_p2, %p957_p1 }
  0x26   : > { %p955_p0 = pneg %p954_p13 }
  0x27   : > { %460 = vperm.xlu0 %931, %v450_v30   ;;  %487 = vperm.xlu2 %933, %v453_v43  }
  0x28   : > { %469 = vperm.xlu1 %932, %v451_v37   ;;  %p960_p4 = pnand %p959_p3, %p955_p0 }
  0x2c   : > { %879 = vmatpush.bf16.xpose.msra.mxu3 %v405_v11  ;;  %415 = vmatpush.bf16.xpose.msra.mxu0 %v405_v11 }
  0x2d   : > { %878 = vmatpush.bf16.xpose.msra.mxu2 %v405_v11 }
  0x2f   : > { %641 = vperm.xlu0 %931, %v627_v36   ;;  %632 = vperm.xlu2 %933, %v626_v49  }
  0x30   : > { %650 = vperm.xlu1 %932, %v628_v42  }
  0x34   : > { %881 = vmatpush.bf16.xpose.msra.mxu3 %v402_v17  ;;  %416 = vmatpush.bf16.xpose.msra.mxu0 %v402_v17 }
  0x35   : > { %880 = vmatpush.bf16.xpose.msra.mxu2 %v402_v17 }
  0x37   : > { %704 = vperm.xlu0 %931, %v694_v41   ;;  %659 = vperm.xlu2 %933, %v629_v50  }
  0x38   : > { %709 = vperm.xlu1 %932, %v695_v48  }
  0x3c   : > { %883 = vmatpush.bf16.xpose.msra.mxu3 %v399_v21  ;;  %417 = vmatpush.bf16.xpose.msra.mxu0 %v399_v21 }
  0x3d   : > { %882 = vmatpush.bf16.xpose.msra.mxu2 %v399_v21 }
  0x3f   : > { %719 = vperm.xlu0 %931, %v697_v47   ;;  %714 = vperm.xlu2 %933, %v696_v52  }
  0x44   : > { %885 = vmatpush.bf16.xpose.msra.mxu3 %v396_v27  ;;  %418 = vmatpush.bf16.xpose.msra.mxu0 %v396_v27 }
  0x45   : > { %884 = vmatpush.bf16.xpose.msra.mxu2 %v396_v27 }
  0x4c   : > { %887 = vmatpush.bf16.xpose.msra.mxu3 %v393_v33  ;;  %419 = vmatpush.bf16.xpose.msra.mxu0 %v393_v33 }
  0x4d   : > { %886 = vmatpush.bf16.xpose.msra.mxu2 %v393_v33 }
  0x54   : > { %889 = vmatpush.bf16.xpose.msra.mxu3 %v390_v40  ;;  %420 = vmatpush.bf16.xpose.msra.mxu0 %v390_v40 }
  0x55   : > { %888 = vmatpush.bf16.xpose.msra.mxu2 %v390_v40 }
  0x5b   : > { %854 = vmatmul.msk.bf16.vlgmr.msra.gmra.mxu3 %vm376_vm0, %v870_v44  ;;  %852 = vmatmul.msk.bf16.vlgmr.msra.gmra.mxu0 %vm376_vm0, %v868_v45 }
  0x5c   : > { %853 = vmatmul.msk.bf16.vlgmr.msra.gmra.mxu2 %vm376_vm0, %v869_v46 }
  0x6b   : > { %855 = vmatmul.msk.bf16.gmra.mxu3 %vm376_vm0, %v871_v51 }
  0x79   : > { %v479_v57 = vpop.permute.xlu2 %478 }
  0x7a   : > { %v484_v8 = vperm.slane %v479_v57, %v1192_v63 }
  0x7c   : > { %v540_v24 = vunpack.c.l.bf16 %v484_v8 }
  0x81   : > { %v488_v9 = vpop.permute.xlu2 %487 }
  0x82   : > { %v493_v12 = vperm.slane %v488_v9, %v1192_v63 }
  0x84   : > { %v541_v26 = vunpack.c.l.bf16 %v493_v12 }
  0x89   : > { %v515_v54 = vpop.permute.xlu0 %514 }
  0x8a   : > { %v497_v55 = vpop.permute.xlu1 %496  ;;  %v520_v2 = vperm.slane %v515_v54, %v1192_v63 }
  0x8b   : > { %v502_v7 = vperm.slane %v497_v55, %v1192_v63 }
  0x8c   : > { %v544_v11 = vunpack.c.l.bf16 %v520_v2 }
  0x8d   : > { %v542_v23 = vunpack.c.l.bf16 %v502_v7 }
  0x91   : > { %v524_v0 = vpop.permute.xlu0 %523 }
  0x92   : > { %v506_v1 = vpop.permute.xlu1 %505  ;;  %v529_v6 = vperm.slane %v524_v0, %v1192_v63 }
  0x93   : > { %v511_v4 = vperm.slane %v506_v1, %v1192_v63 }
  0x94   : > { %v545_v22 = vunpack.c.l.bf16 %v529_v6 }
  0x95   : > { %v543_v15 = vunpack.c.l.bf16 %v511_v4 }
  0x99   : > { %v461_v25 = vpop.permute.xlu0 %460 }
  0x9a   : > { %v470_v28 = vpop.permute.xlu1 %469  ;;  %v466_v31 = vperm.slane %v461_v25, %v1192_v63 }
  0x9b   : > { %v475_v32 = vperm.slane %v470_v28, %v1192_v63 }
  0x9c   : > { %v538_v42 = vunpack.c.l.bf16 %v466_v31 }
  0x9d   : > { %v539_v43 = vunpack.c.l.bf16 %v475_v32 }
  0xa1   : > { %v642_v0 = vpop.permute.xlu0 %641 }
  0xa2   : > { %v647_v2 = vperm.slane %v642_v0, %v1192_v63 }
  0xa4   : > { %v671_v8 = vunpack.c.l.bf16 %v647_v2 }
  0xd8   : > { %v422_v61 = vpop.f32.mrf.mxu0 }
  0xd9   : > { %v442_v33 = vpack.c.bf16 %v422_v61, %v422_v61  ;;  %v873_v61 = vld [vmem:[%s1252_s3 + $0x8] sm:$0xff] }
  0xdb   : > { %v530_v44 = vunpack.c.l.bf16 %v442_v33 }
  0xdd   : > { %v546_v51 = vadd.f32 %v538_v42, %v530_v44 }
  0xde   : > { %v432_v53 = vpop.f32.mrf.mxu3 }
  0xdf   : > { %v427_v58 = vpop.f32.mrf.mxu2  ;;  %v446_v13 = vpack.c.bf16 %v432_v53, %v432_v53 }
  0xe0   : > { %v424_v18 = vpop.f32.mrf.mxu0  ;;  %v444_v19 = vpack.c.bf16 %v427_v58, %v427_v58  ;;  %v570_v58 = vmax.f32 %v546_v51, 0.0  ;;  %v738_v51 = vld [vmem:[%s322_s11] sm:$0x1] }
  0xe1   : > { %v534_v27 = vunpack.c.l.bf16 %v446_v13  ;;  %v443_v34 = vpack.c.bf16 %v424_v18, %v424_v18 }
  0xe2   : > { %v532_v36 = vunpack.c.l.bf16 %v444_v19 }
  0xe3   : > { %v550_v39 = vadd.f32 %v542_v23, %v534_v27  ;;  %v531_v45 = vunpack.c.l.bf16 %v443_v34 }
  0xe4   : > { %v548_v46 = vadd.f32 %v540_v24, %v532_v36 }
  0xe5   : > { %v574_v50 = vmax.f32 %v550_v39, 0.0  ;;  %v547_v52 = vadd.f32 %v539_v43, %v531_v45 }
  0xe6   : > { %v434_v56 = vpop.f32.mrf.mxu3  ;;  %v572_v55 = vmax.f32 %v548_v46, 0.0 }
  0xe7   : > { %v447_v5 = vpack.c.bf16 %v434_v56, %v434_v56  ;;  %v429_v10 = vpop.f32.mrf.mxu2  ;;  %v571_v56 = vmax.f32 %v547_v52, 0.0  ;;  %v740_v52 = vld [vmem:[%s322_s11 + $0x1] sm:$0x1] }
  0xe8   : > { %v445_v20 = vpack.c.bf16 %v429_v10, %v429_v10  ;;  %v651_v10 = vpop.permute.xlu1 %650 }
  0xe9   : > { %v535_v17 = vunpack.c.l.bf16 %v447_v5  ;;  %v578_v59 = vpack.c.bf16 %v571_v56, %v570_v58  ;;  %v633_v5 = vpop.permute.xlu2 %632  ;;  %v656_v12 = vperm.slane %v651_v10, %v1192_v63  ;;  %v741_v56 = vmul.f32 0.3, %v740_v52 }
  0xea   : > { %v533_v37 = vunpack.c.l.bf16 %v445_v20  ;;  %v638_v6 = vperm.slane %v633_v5, %v1192_v63  ;;  %v736_v58 = vstv %s735_s13 }
  0xeb   : > { %v551_v35 = vadd.f32 %v543_v15, %v535_v17  ;;  %v672_v17 = vunpack.c.l.bf16 %v656_v12 }
  0xec   : > { %v549_v47 = vadd.f32 %v541_v26, %v533_v37 }
  0xed   : > { %v575_v49 = vmax.f32 %v551_v35, 0.0 }
  0xee   : > { %v437_v62 = vpop.f32.mrf.mxu3  ;;  %v573_v53 = vmax.f32 %v549_v47, 0.0 }
  0xef   : > { %v448_v3 = vpack.c.bf16 %v437_v62, %v437_v62  ;;  %v580_v54 = vpack.c.bf16 %v575_v49, %v574_v50 }
  0xf0   : > { %v579_v57 = vpack.c.bf16 %v573_v53, %v572_v55  ;;  %v710_v37 = vpop.permute.xlu1 %709  ;;  %v739_v55 = vmul.f32 0.5, %v738_v51 }
  0xf1   : > { %v536_v14 = vunpack.c.l.bf16 %v448_v3 }
  0xf3   : > { %v552_v30 = vadd.f32 %v544_v11, %v536_v14  ;;  %v670_v11 = vunpack.c.l.bf16 %v638_v6 }
  0xf5   : > { %v576_v40 = vmax.f32 %v552_v30, 0.0  ;;  %v705_v30 = vpop.permute.xlu0 %704 }
  0xf6   : > { %v439_v16 = vpop.f32.mrf.mxu3 }
  0xf7   : > { %v449_v21 = vpack.c.bf16 %v439_v16, %v439_v16 }
  0xf9   : > { %v537_v29 = vunpack.c.l.bf16 %v449_v21 }
  0xfb   : > { %v553_v38 = vadd.f32 %v545_v22, %v537_v29  ;;  %v660_v22 = vpop.permute.xlu2 %659 }
  0xfc   : > { %v665_v23 = vperm.slane %v660_v22, %v1192_v63 }
  0xfd   : > { %v577_v41 = vmax.f32 %v553_v38, 0.0  ;;  %v720_v45 = vpop.permute.xlu0 %719 }
  0xfe   : > { %v673_v31 = vunpack.c.l.bf16 %v665_v23 }
  0xff   : > { %v581_v48 = vpack.c.bf16 %v577_v41, %v576_v40 }
 0x101   : > { %607 = vmatpush.bf16.msra.mxu1 %v581_v48 }
 0x103   : > { %v715_v40 = vpop.permute.xlu2 %714 }
 0x105   : > { %608 = vmatpush.bf16.msra.mxu1 %v580_v54 }
 0x109   : > { %609 = vmatpush.bf16.msra.mxu1 %v579_v57 }
 0x10d   : > { %610 = vmatpush.bf16.msra.mxu1 %v578_v59 }
 0x110   : > { %864 = vmatmul.msk.bf16.vlgmr.msra.gmra.mxu1 %vm596_vm1, %v872_v60  ;;  %v742_v60 = vadd.f32 %v741_v56, %v739_v55 }
 0x120   : > { %865 = vmatmul.msk.bf16.gmra.mxu1 %vm596_vm1, %v873_v61 }
 0x18d   : > { %v612_v62 = vpop.f32.mrf.mxu1 }
 0x18e   : > { %v622_v3 = vpack.c.bf16 %v612_v62, %v612_v62 }
 0x190   : > { %v666_v9 = vunpack.c.l.bf16 %v622_v3 }
 0x192   : > { %v674_v15 = vadd.f32 %v670_v11, %v666_v9 }
 0x194   : > { %v686_v20 = vmax.f32 %v674_v15, 0.0 }
 0x195   : > { %v614_v1 = vpop.f32.mrf.mxu1 }
 0x196   : > { %v623_v4 = vpack.c.bf16 %v614_v1, %v614_v1  ;;  %v690_v27 = vpack.c.bf16 %v686_v20, %v686_v20 }
 0x198   : > { %v667_v7 = vunpack.c.l.bf16 %v623_v4  ;;  %v698_v34 = vunpack.c.l.bf16 %v690_v27 }
 0x19a   : > { %v675_v13 = vadd.f32 %v671_v8, %v667_v7  ;;  %v722_v63 = vmul.f32 %v705_v30, %v698_v34 }
 0x19c   : > { %v687_v18 = vmax.f32 %v675_v13, 0.0 }
 0x19d   : > { %v617_v14 = vpop.f32.mrf.mxu1 }
 0x19e   : > { %v624_v16 = vpack.c.bf16 %v617_v14, %v617_v14  ;;  %v691_v24 = vpack.c.bf16 %v687_v18, %v687_v18 }
 0x1a0   : > { %v668_v19 = vunpack.c.l.bf16 %v624_v16  ;;  %v699_v32 = vunpack.c.l.bf16 %v691_v24 }
 0x1a2   : > { %v676_v21 = vadd.f32 %v672_v17, %v668_v19  ;;  %v723_v38 = vmul.f32 %v710_v37, %v699_v32 }
 0x1a4   : > { %v688_v25 = vmax.f32 %v676_v21, 0.0  ;;  %v726_v43 = vadd.f32 %v723_v38, %v722_v63 }
 0x1a5   : > { %v619_v26 = vpop.f32.mrf.mxu1 }
 0x1a6   : > { %v692_v28 = vpack.c.bf16 %v688_v25, %v688_v25  ;;  %v625_v29 = vpack.c.bf16 %v619_v26, %v619_v26 }
 0x1a8   : > { %v669_v33 = vunpack.c.l.bf16 %v625_v29  ;;  %v700_v35 = vunpack.c.l.bf16 %v692_v28 }
 0x1aa   : > { %v677_v36 = vadd.f32 %v673_v31, %v669_v33  ;;  %v724_v41 = vmul.f32 %v715_v40, %v700_v35 }
 0x1ac   : > { %v689_v39 = vmax.f32 %v677_v36, 0.0  ;;  %v727_v46 = vadd.f32 %v726_v43, %v724_v41 }
 0x1ae   : > { %v693_v42 = vpack.c.bf16 %v689_v39, %v689_v39 }
 0x1b0   : > { %v701_v44 = vunpack.c.l.bf16 %v693_v42 }
 0x1b2   : > { %v725_v47 = vmul.f32 %v720_v45, %v701_v44 }
 0x1b4   : > { %v728_v48 = vadd.f32 %v727_v46, %v725_v47 }
 0x1b6   : > { %v729_v49 = vrot.slane %v728_v48, 4 }
 0x1b8   : > { %v730_v50 = vadd.f32 %v729_v49, %v728_v48 }
 0x1ba   : > { %v731_v53 = vrot.slane %v730_v50, 2 }
 0x1bc   : > { %v732_v54 = vadd.f32 %v731_v53, %v730_v50 }
 0x1be   : > { %v733_v57 = vrot.slane %v732_v54, 1 }
 0x1c0   : > { %v734_v59 = vadd.f32 %v733_v57, %v732_v54 }
 0x1c2   : > { %v737_v61 = vadd.f32 %v736_v58, %v734_v59 }
 0x1c4   : > { %v743_v62 = vadd.f32 %v742_v60, %v737_v61 }
 0x1c6   : > { %v744_v0 = vmul.f32 0.5, %v743_v62 }
 0x1c8   : > { %934 = vtanh.f32 %v744_v0 }
 0x1ce   : > { %v935_v1 = vpop.eup %934 }
 0x1cf   : > { %v746_v2 = vadd.f32 1.0, %v935_v1 }
 0x1d1   : > { %v747_v3 = vmul.f32 0.5, %v746_v2 }
 0x1d3   : > { %748 = vst [vmem:[%s312_s21] sm:$0x1] %v747_v3 }
 0x1d4   : > { %963 = shalt.err (!%p960_p4)
}
 0x1d5   : > { %890 = dma.vmem_to_hbm [thread:$0]  (%p1088_p5), %s761_s23, 16, %s763_s24, %s750_s25  }
 0x1d6 PF: > { %p896_p7 = scmp.ge.s32.totalorder %s998_s10, 2  ;;  %s774_s14 = sand.u32 1, %s986_s29  }
 0x1d7   : > { %s775_s18 = scalar_lea.sflag [#allocation4], %s774_s14 }
 0x1d8   : > { %p893_p8 = pnand %p896_p7, %p1092_p6 }
 0x1da   : > { %p894_p9 = pneg %p893_p8 }
 0x1dc   : > { %981 = dma.done.wait (%p894_p9), %s775_s18, 16  }
 0x1dd   : > { %983 = vsyncadd (%p894_p9), %s775_s18, 4294967280  ;;  %p19_p10 = scmp.ge.s32.totalorder %s1075_s12, 4   ;;  %s1260_s29 = smov %s990_s30 }
 0x1de   : > { %s1261_s30 = smov %s994_s9  ;;  %s1262_s9 = smov %s1086_s15 }
 0x1df   : > { %s1263_s10 = smov %s1075_s12  ;;  %21 = sbr.rel (!%p19_p10) target bundleno = 5 (0x5), region = 90 }
 0x1e4   :  { %780 = vsyncpa [#allocation4], 1 }
 0x1e5   :  { %782 = vsyncpa [#allocation4 + $0x1], 1 }

</bundles_post_ra>
